<compile_context>
chip_gen: v7x
topology: tpu7x:2x2x1
jax: 0.10.0
libtpu: 0.0.40
codegen_flags: <defaults>
</compile_context>

<pallas_src>
import functools

import jax
import jax.numpy as jnp
from jax.experimental import pallas as pl
from jax.experimental.pallas import tpu as pltpu


def _multi_accuracy_kernel(logits_ref, labels_ref, out_ref, acc_ref, *,
                           n_valid, block_rows, has_tail):
    i = pl.program_id(0)
    last = pl.num_programs(0) - 1

    # Zero the (1, 1) partial-count accumulator on the first grid step.
    @pl.when(i == 0)
    def _():
        acc_ref[...] = jnp.zeros_like(acc_ref)

    x = logits_ref[...]            # (TB, C), native dtype -- no upcast
    lbl = labels_ref[...]          # (TB, 1) int32

    # Row-wise argmax with first-occurrence tie-breaking (matches torch.argmax):
    # pred = min over columns j of (j if x[:, j] == rowmax else SENTINEL).
    row_max = jnp.max(x, axis=1, keepdims=True)                   # (TB, 1)
    col = jax.lax.broadcasted_iota(jnp.int32, x.shape, 1)         # (TB, C)
    sentinel = jnp.int32(2 ** 30)
    pred = jnp.min(jnp.where(x == row_max, col, sentinel),
                   axis=1, keepdims=True)                         # (TB, 1)

    correct = (pred == lbl).astype(jnp.float32)                   # (TB, 1)
    inv_n = jnp.float32(1.0 / n_valid)

    if has_tail:
        # Ragged batch: only the final block holds out-of-range rows, so the
        # iota / compare / mask work is gated to that single step.
        @pl.when(i < last)
        def _():
            acc_ref[...] += jnp.sum(correct)

        @pl.when(i == last)
        def _():
            row = (jax.lax.broadcasted_iota(jnp.int32, (block_rows, 1), 0)
                   + i * block_rows)
            acc_ref[...] += jnp.sum(jnp.where(row < n_valid, correct, 0.0))
            out_ref[0] = jnp.sum(acc_ref[...]) * inv_n
    else:
        acc_ref[...] += jnp.sum(correct)

        @pl.when(i == last)
        def _():
            out_ref[0] = jnp.sum(acc_ref[...]) * inv_n


def multi_accuracy(logits, labels, *, target_block_bytes=8 * 1024 * 1024,
                   vmem_budget_bytes=40 * 1024 * 1024):
    """Pallas TPU equivalent of MultiAccuracy.forward(logits, labels)."""
    assert logits.ndim == 2, "(B, F)"
    assert labels.ndim == 1, "(B,)"
    b, c = logits.shape
    assert labels.shape[0] == b

    # Labels as a (B, 1) int32 column so they tile cleanly alongside the logits.
    labels_2d = labels.astype(jnp.int32).reshape(b, 1)

    itemsize = jnp.dtype(logits.dtype).itemsize
    # Per-row VMEM cost: double-buffered logits + labels rows plus ~3 int32-wide
    # (TB, C) elementwise temporaries (column iota, select result, mask slack).
    bytes_per_row = c * (2 * itemsize + 12) + 2 * 4
    rows_target = max(8, (target_block_bytes // max(1, c * itemsize)) // 8 * 8)
    rows_budget = max(8, (vmem_budget_bytes // max(1, bytes_per_row)) // 8 * 8)
    rows_fit = min(rows_target, rows_budget)
    tb = b if b <= rows_fit else rows_fit
    grid = (pl.cdiv(b, tb),)
    has_tail = (b % tb) != 0

    # Size the scoped-VMEM limit from the real footprint of the chosen block so
    # very wide C (tb clamped to 8 rows) compiles instead of hitting the scoped
    # default; keep sane lower/upper bounds.
    footprint = tb * bytes_per_row + (1 << 16)
    vmem_limit = int(min(100 * 1024 * 1024,
                         max(32 * 1024 * 1024, footprint + footprint // 4)))

    kernel = functools.partial(_multi_accuracy_kernel,
                               n_valid=b, block_rows=tb, has_tail=has_tail)

    out = pl.pallas_call(
        kernel,
        out_shape=jax.ShapeDtypeStruct((1,), jnp.float32),
        grid_spec=pltpu.PrefetchScalarGridSpec(
            num_scalar_prefetch=0,
            grid=grid,
            in_specs=[
                pl.BlockSpec((tb, c), lambda i: (i, 0)),   # logits row block
                pl.BlockSpec((tb, 1), lambda i: (i, 0)),   # labels row block
            ],
            out_specs=pl.BlockSpec(memory_space=pltpu.MemorySpace.SMEM),
            scratch_shapes=[
                pltpu.VMEM((1, 1), jnp.float32),           # running correct count
            ],
        ),
        compiler_params=pltpu.CompilerParams(
            dimension_semantics=("arbitrary",),
            vmem_limit_bytes=vmem_limit,
        ),
    )(logits, labels_2d)

    return out[0]


def _reference_accuracy(logits, labels):
    preds = jnp.argmax(logits.astype(jnp.float32), axis=1)
    return jnp.mean((preds == labels).astype(jnp.float32))


if __name__ == "__main__":
    key = jax.random.PRNGKey(0)
    k1, k2, k3, k4, k5, k6 = jax.random.split(key, 6)

    # Case 1: small case consistent with the module (batch=64, num_classes=10),
    # single full-batch block path (no tail, no mask).
    b1, c1 = 64, 10
    logits1 = jax.random.normal(k1, (b1, c1), dtype=jnp.float32)
    labels1 = jax.random.randint(k2, (b1,), 0, c1, dtype=jnp.int32)
    out1 = jax.block_until_ready(multi_accuracy(logits1, labels1))
    ref1 = _reference_accuracy(logits1, labels1)
    assert jnp.allclose(out1, ref1, atol=1e-6), (out1, ref1)

    # Case 2: bf16 with a deliberately tiny block size -> multi-block grid with
    # a ragged last block (exercises the gated tail mask + accumulator carry).
    b2, c2 = 2000, 32
    logits2 = jax.random.normal(k3, (b2, c2), dtype=jnp.bfloat16)
    labels2 = jax.random.randint(k4, (b2,), 0, c2, dtype=jnp.int32)
    out2 = jax.block_until_ready(
        multi_accuracy(logits2, labels2, target_block_bytes=8 * 1024))
    ref2 = _reference_accuracy(logits2, labels2)
    assert jnp.allclose(out2, ref2, atol=1e-6), (out2, ref2)

    # Case 3: multi-block grid with no tail (exercises the mask-free fast path).
    b3, c3 = 512, 16
    logits3 = jax.random.normal(k5, (b3, c3), dtype=jnp.float32)
    labels3 = jax.random.randint(k6, (b3,), 0, c3, dtype=jnp.int32)
    out3 = jax.block_until_ready(
        multi_accuracy(logits3, labels3, target_block_bytes=16 * 1024))
    ref3 = _reference_accuracy(logits3, labels3)
    assert jnp.allclose(out3, ref3, atol=1e-6), (out3, ref3)

    print("KERNEL_OK")
</pallas_src>

<mosaic_0001>
module attributes {stable_mosaic.version = 11 : i64} {
  func.func @_multi_accuracy_kernel(%arg0: i32, %arg1: memref<64x10xf32, #tpu.memory_space<vmem>>, %arg2: memref<64x1xi32, #tpu.memory_space<vmem>>, %arg3: memref<1xf32, #tpu.memory_space<smem>>, %arg4: memref<1x1xf32, #tpu.memory_space<vmem>>) attributes {dimension_semantics = [#tpu.dimension_semantics<arbitrary>], iteration_bounds = array<i64: 1>, scalar_prefetch = 0 : i64, scratch_operands = 1 : i64, tpu.core_type = #tpu.core_type<tc>, window_params = [{transform_indices = @transform_0, window_bounds = array<i64: 64, 10>}, {transform_indices = @transform_1, window_bounds = array<i64: 64, 1>}, {transform_indices = @transform_2, window_bounds = array<i64: 1>}]} {
    %c0_i32 = arith.constant 0 : i32
    %0 = arith.cmpi eq, %arg0, %c0_i32 : i32
    %1 = arith.extui %0 : i1 to i32
    %c0_i32_0 = arith.constant 0 : i32
    %2 = arith.cmpi ne, %1, %c0_i32_0 : i32
    scf.if %2 {
      %cst_13 = arith.constant 0.000000e+00 : f32
      %28 = vector.broadcast %cst_13 : f32 to vector<1x1xf32>
      %c0_14 = arith.constant 0 : index
      %c0_15 = arith.constant 0 : index
      %29 = vector.load %arg4[%c0_14, %c0_15] : memref<1x1xf32, #tpu.memory_space<vmem>>, vector<1x1xf32>
      tpu.vector_store %arg4[%c0_14, %c0_15], %28 {strides = array<i32>} : memref<1x1xf32, #tpu.memory_space<vmem>>, vector<1x1xf32>,
    } else {
    }
    %c0 = arith.constant 0 : index
    %c0_1 = arith.constant 0 : index
    %3 = vector.load %arg1[%c0, %c0_1] : memref<64x10xf32, #tpu.memory_space<vmem>>, vector<64x10xf32>
    %c0_2 = arith.constant 0 : index
    %c0_3 = arith.constant 0 : index
    %4 = vector.load %arg2[%c0_2, %c0_3] : memref<64x1xi32, #tpu.memory_space<vmem>>, vector<64x1xi32>
    %cst = arith.constant dense<0xFF800000> : vector<64xf32>
    %5 = vector.multi_reduction <maximumf>, %3, %cst [1] : vector<64x10xf32> to vector<64xf32>
    %6 = vector.shape_cast %5 : vector<64xf32> to vector<64x1xf32>
    %7 = tpu.iota {dimensions = array<i32: 1>} : vector<64x10xi32>
    %8 = vector.broadcast %6 : vector<64x1xf32> to vector<64x10xf32>
    %9 = arith.cmpf oeq, %3, %8 : vector<64x10xf32>
    %c1073741824_i32 = arith.constant 1073741824 : i32
    %10 = vector.broadcast %c1073741824_i32 : i32 to vector<64x10xi32>
    %11 = arith.select %9, %7, %10 : vector<64x10xi1>, vector<64x10xi32>
    %cst_4 = arith.constant dense<2147483647> : vector<64xi32>
    %12 = vector.multi_reduction <minsi>, %11, %cst_4 [1] : vector<64x10xi32> to vector<64xi32>
    %13 = vector.shape_cast %12 : vector<64xi32> to vector<64x1xi32>
    %14 = arith.cmpi eq, %13, %4 : vector<64x1xi32>
    %15 = arith.extui %14 : vector<64x1xi1> to vector<64x1xi32>
    %16 = arith.sitofp %15 : vector<64x1xi32> to vector<64x1xf32>
    %c0_5 = arith.constant 0 : index
    %c0_6 = arith.constant 0 : index
    %17 = vector.load %arg4[%c0_5, %c0_6] : memref<1x1xf32, #tpu.memory_space<vmem>>, vector<1x1xf32>
    %18 = vector.shape_cast %16 : vector<64x1xf32> to vector<1x64x1xf32>
    %cst_7 = arith.constant dense<0.000000e+00> : vector<1xf32>
    %19 = vector.multi_reduction <add>, %18, %cst_7 [1, 2] : vector<1x64x1xf32> to vector<1xf32>
    %20 = vector.shape_cast %19 : vector<1xf32> to vector<1x1x1xf32>
    %21 = vector.extract %20[0, 0, 0] : f32 from vector<1x1x1xf32>
    %22 = vector.broadcast %21 : f32 to vector<1x1xf32>
    %23 = arith.addf %17, %22 : vector<1x1xf32>
    %c0_8 = arith.constant 0 : index
    %c0_9 = arith.constant 0 : index
    %24 = vector.load %arg4[%c0_8, %c0_9] : memref<1x1xf32, #tpu.memory_space<vmem>>, vector<1x1xf32>
    tpu.vector_store %arg4[%c0_8, %c0_9], %23 {strides = array<i32>} : memref<1x1xf32, #tpu.memory_space<vmem>>, vector<1x1xf32>,
    %c0_i32_10 = arith.constant 0 : i32
    %25 = arith.cmpi eq, %arg0, %c0_i32_10 : i32
    %26 = arith.extui %25 : i1 to i32
    %cst_11 = arith.constant 1.562500e-02 : f32
    %c0_i32_12 = arith.constant 0 : i32
    %27 = arith.cmpi ne, %26, %c0_i32_12 : i32
    scf.if %27 {
      %c0_13 = arith.constant 0 : index
      %c0_14 = arith.constant 0 : index
      %28 = vector.load %arg4[%c0_13, %c0_14] : memref<1x1xf32, #tpu.memory_space<vmem>>, vector<1x1xf32>
      %29 = vector.shape_cast %28 : vector<1x1xf32> to vector<1x1x1xf32>
      %cst_15 = arith.constant dense<0.000000e+00> : vector<1xf32>
      %30 = vector.multi_reduction <add>, %29, %cst_15 [1, 2] : vector<1x1x1xf32> to vector<1xf32>
      %31 = vector.shape_cast %30 : vector<1xf32> to vector<1x1x1xf32>
      %32 = vector.extract %31[0, 0, 0] : f32 from vector<1x1x1xf32>
      %33 = arith.mulf %32, %cst_11 : f32
      %c0_16 = arith.constant 0 : index
      %34 = memref.load %arg3[%c0_16] : memref<1xf32, #tpu.memory_space<smem>>
      memref.store %33, %arg3[%c0_16] : memref<1xf32, #tpu.memory_space<smem>>
    } else {
    }
    return
  }
  func.func @transform_0(%arg0: i32) -> (i32, i32) {
    %c0_i32 = arith.constant 0 : i32
    %c0_i32_0 = arith.constant 0 : i32
    return %arg0, %c0_i32 : i32, i32
  }
  func.func @transform_1(%arg0: i32) -> (i32, i32) {
    %c0_i32 = arith.constant 0 : i32
    %c0_i32_0 = arith.constant 0 : i32
    return %arg0, %c0_i32 : i32, i32
  }
  func.func @transform_2(%arg0: i32) -> i32 {
    %c0_i32 = arith.constant 0 : i32
    %c0_i32_0 = arith.constant 0 : i32
    return %c0_i32 : i32
  }
}

</mosaic_0001>

<bundles_post_ra>
// kernel: tpu_custom_call.1
= control target key start
LH: loop header
LB: loop body
LE: loop exit
PB: predicated region body
PF: predicated region fallthrough
CT: control target
= control target key end

     0   :  { %vm34_vm0 = vcmask 80896   ;;  %s404_s0 = inlined_call_operand.vmem [shape: f32[64,10], index: 0, kind: input, shape index: {}]   ;;  %s405_s1 = inlined_call_operand.vmem [shape: s32[64,1], index: 1, kind: input, shape index: {}]   ;;  %s406_s2 = inlined_call_operand.hbm [shape: f32[1], index: 2, kind: output, shape index: {}]  }
   0x1   :  { %v18_v0 = vld [vmem:[%s404_s0] sm:$0xff]  ;;  %v20_v1 = vld [vmem:[%s404_s0 + $0x10] sm:$0xff]  ;;  %v19_v2 = vld [vmem:[%s404_s0 + $0x8] sm:$0xff] }
   0x2   :  { %v35_v3 = vsel %vm34_vm0, %v18_v0, -inf  ;;  %v41_v4 = vsel %vm34_vm0, %v20_v1, -inf  ;;  %v21_v5 = vld [vmem:[%s404_s0 + $0x18] sm:$0xff]  ;;  %v38_v6 = vsel %vm34_vm0, %v19_v2, -inf }
   0x3   :  { %36 = vmax.xlane.f32.xlu0 %v35_v3  ;;  %42 = vmax.xlane.f32.xlu1 %v41_v4  ;;  %v44_v7 = vsel %vm34_vm0, %v21_v5, -inf }
   0x4   :  { %7 = vsyncpa [#allocation4], 0  ;;  %v22_v8 = vld [vmem:[%s404_s0 + $0x20] sm:$0xff]  ;;  %v23_v9 = vld [vmem:[%s404_s0 + $0x28] sm:$0xff]  ;;  %v59_v16 = vlaneseq  ;;  %s287_s16 = scalar_lea.hbm %s406_s2, 16 }
   0x5   :  { %v47_v10 = vsel %vm34_vm0, %v22_v8, -inf  ;;  %v50_v11 = vsel %vm34_vm0, %v23_v9, -inf  ;;  %v24_v12 = vld [vmem:[%s404_s0 + $0x30] sm:$0xff]  ;;  %v25_v13 = vld [vmem:[%s404_s0 + $0x38] sm:$0xff]  ;;  %p288_p0 = scmp.ne.s32.totalorder %s406_s2, %s287_s16  ;;  %p291_p1 = scmp.lt.u32.totalorder %s287_s16, %s406_s2 }
   0x6   :  { %v53_v14 = vsel %vm34_vm0, %v24_v12, -inf  ;;  %v56_v15 = vsel %vm34_vm0, %v25_v13, -inf  ;;  %v60_v17 = vand.u32 127, %v59_v16 }
   0x7   :  { %39 = vmax.xlane.f32.xlu0 %v38_v6  ;;  %45 = vmax.xlane.f32.xlu1 %v44_v7  ;;  %p293_p2 = pnand %p291_p1, %p288_p0 }
   0xb   :  { %48 = vmax.xlane.f32.xlu0 %v47_v10  ;;  %51 = vmax.xlane.f32.xlu1 %v50_v11 }
   0xf   :  { %54 = vmax.xlane.f32.xlu0 %v53_v14  ;;  %57 = vmax.xlane.f32.xlu1 %v56_v15 }
  0x90   :  { %v37_v18 = vpop.xlane.xlu0 %36  ;;  %v43_v19 = vpop.xlane.xlu1 %42 }
  0x91   :  { %vm61_vm1 = vcmp.eq.f32.partialorder %v18_v0, %v37_v18  ;;  %vm63_vm2 = vcmp.eq.f32.partialorder %v20_v1, %v43_v19 }
  0x92   :  { %v69_v20 = vsel %vm61_vm1, %v60_v17, 1073741824  ;;  %v71_v21 = vsel %vm63_vm2, %v60_v17, 1073741824  ;;  %vm222_vm2 = vcmask 7168  }
  0x93   :  { %v77_v22 = vsel %vm34_vm0, %v69_v20, 2147483647  ;;  %v107_v23 = vsel %vm34_vm0, %v71_v21, 2147483647 }
  0x94   :  { %v40_v24 = vpop.xlane.xlu0 %39  ;;  %v46_v25 = vpop.xlane.xlu1 %45  ;;  %v79_v26 = vshra.s32 %v77_v22, 16  ;;  %v109_v27 = vshra.s32 %v107_v23, 16  ;;  %v78_v58 = vand.u32 65535, %v77_v22  ;;  %v108_v62 = vand.u32 65535, %v107_v23 }
  0x95   :  { %vm62_vm3 = vcmp.eq.f32.partialorder %v19_v2, %v40_v24  ;;  %vm64_vm4 = vcmp.eq.f32.partialorder %v21_v5, %v46_v25 }
  0x96   :  { %v70_v28 = vsel %vm62_vm3, %v60_v17, 1073741824  ;;  %v72_v29 = vsel %vm64_vm4, %v60_v17, 1073741824  ;;  %v81_v30 = vcvt.s32.f32 %v79_v26  ;;  %v111_v35 = vcvt.s32.f32 %v109_v27 }
  0x97   :  { %v92_v31 = vsel %vm34_vm0, %v70_v28, 2147483647  ;;  %v122_v32 = vsel %vm34_vm0, %v72_v29, 2147483647  ;;  %v80_v60 = vcvt.s32.f32 %v78_v58  ;;  %v110_v3 = vcvt.s32.f32 %v108_v62 }
  0x98   :  { %82 = vmin.xlane.f32.xlu0 %v81_v30  ;;  %v49_v33 = vpop.xlane.xlu0 %48  ;;  %v52_v34 = vpop.xlane.xlu1 %51  ;;  %v94_v36 = vshra.s32 %v92_v31, 16  ;;  %v124_v37 = vshra.s32 %v122_v32, 16  ;;  %v93_v61 = vand.u32 65535, %v92_v31  ;;  %v123_v4 = vand.u32 65535, %v122_v32  ;;  %v26_v32 = vld [vmem:[%s405_s1] sm:$0xff] }
  0x99   :  { %vm65_vm5 = vcmp.eq.f32.partialorder %v22_v8, %v49_v33  ;;  %vm66_vm6 = vcmp.eq.f32.partialorder %v23_v9, %v52_v34 }
  0x9a   :  { %v73_v38 = vsel %vm65_vm5, %v60_v17, 1073741824  ;;  %v74_v39 = vsel %vm66_vm6, %v60_v17, 1073741824  ;;  %v96_v40 = vcvt.s32.f32 %v94_v36  ;;  %v126_v45 = vcvt.s32.f32 %v124_v37 }
  0x9b   :  { %v137_v41 = vsel %vm34_vm0, %v73_v38, 2147483647  ;;  %v152_v42 = vsel %vm34_vm0, %v74_v39, 2147483647  ;;  %v95_v2 = vcvt.s32.f32 %v93_v61  ;;  %v125_v10 = vcvt.s32.f32 %v123_v4 }
  0x9c   :  { %112 = vmin.xlane.f32.xlu0 %v111_v35  ;;  %97 = vmin.xlane.f32.xlu1 %v96_v40  ;;  %v55_v43 = vpop.xlane.xlu0 %54  ;;  %v58_v44 = vpop.xlane.xlu1 %57  ;;  %v139_v46 = vshra.s32 %v137_v41, 16  ;;  %v154_v47 = vshra.s32 %v152_v42, 16  ;;  %v138_v5 = vand.u32 65535, %v137_v41 }
  0x9d   :  { %vm67_vm7 = vcmp.eq.f32.partialorder %v24_v12, %v55_v43  ;;  %vm68_vm8 = vcmp.eq.f32.partialorder %v25_v13, %v58_v44  ;;  %v153_v12 = vand.u32 65535, %v152_v42  ;;  %v27_v43 = vld [vmem:[%s405_s1 + $0x8] sm:$0xff]  ;;  %v28_v44 = vld [vmem:[%s405_s1 + $0x10] sm:$0xff] }
  0x9e   :  { %v75_v48 = vsel %vm67_vm7, %v60_v17, 1073741824  ;;  %v76_v49 = vsel %vm68_vm8, %v60_v17, 1073741824  ;;  %v141_v50 = vcvt.s32.f32 %v139_v46  ;;  %v156_v53 = vcvt.s32.f32 %v154_v47 }
  0x9f   :  { %v167_v51 = vsel %vm34_vm0, %v75_v48, 2147483647  ;;  %v182_v52 = vsel %vm34_vm0, %v76_v49, 2147483647  ;;  %v140_v11 = vcvt.s32.f32 %v138_v5  ;;  %v155_v18 = vcvt.s32.f32 %v153_v12  ;;  %v31_v12 = vld [vmem:[%s405_s1 + $0x28] sm:$0xff] }
  0xa0   :  { %127 = vmin.xlane.f32.xlu1 %v126_v45  ;;  %142 = vmin.xlane.f32.xlu0 %v141_v50  ;;  %v169_v54 = vshra.s32 %v167_v51, 16  ;;  %v184_v55 = vshra.s32 %v182_v52, 16  ;;  %v168_v13 = vand.u32 65535, %v167_v51  ;;  %v183_v20 = vand.u32 65535, %v182_v52 }
  0xa2   :  { %v171_v56 = vcvt.s32.f32 %v169_v54  ;;  %v186_v57 = vcvt.s32.f32 %v184_v55  ;;  %v170_v19 = vcvt.s32.f32 %v168_v13  ;;  %v185_v24 = vcvt.s32.f32 %v183_v20  ;;  %v32_v13 = vld [vmem:[%s405_s1 + $0x30] sm:$0xff] }
  0xa4   :  { %157 = vmin.xlane.f32.xlu1 %v156_v53  ;;  %172 = vmin.xlane.f32.xlu0 %v171_v56 }
  0xa8   :  { %187 = vmin.xlane.f32.xlu1 %v186_v57 }
 0x125   :  { %v83_v59 = vpop.xlane.xlu0 %82 }
 0x126   :  { %vm84_vm9 = vcmp.eq.f32.partialorder %v81_v30, %v83_v59  ;;  %v89_v26 = vcvt.f32.s32 %v83_v59  ;;  %v29_v59 = vld [vmem:[%s405_s1 + $0x18] sm:$0xff] }
 0x127   :  { %v85_v63 = vsel %vm84_vm9, %v80_v60, inf  ;;  %v30_v60 = vld [vmem:[%s405_s1 + $0x20] sm:$0xff] }
 0x128   :  { %86 = vmin.xlane.f32.xlu0 %v85_v63  ;;  %v90_v30 = vshll.u32 %v89_v26, 16 }
 0x129   :  { %v98_v0 = vpop.xlane.xlu1 %97  ;;  %v113_v1 = vpop.xlane.xlu0 %112 }
 0x12a   :  { %vm99_vm10 = vcmp.eq.f32.partialorder %v96_v40, %v98_v0  ;;  %vm114_vm11 = vcmp.eq.f32.partialorder %v111_v35, %v113_v1  ;;  %v104_v27 = vcvt.f32.s32 %v98_v0  ;;  %v119_v28 = vcvt.f32.s32 %v113_v1 }
 0x12b   :  { %v100_v6 = vsel %vm99_vm10, %v95_v2, inf  ;;  %v115_v7 = vsel %vm114_vm11, %v110_v3, inf  ;;  %vm16_vm10 = vcmask 0  }
 0x12c   :  { %101 = vmin.xlane.f32.xlu1 %v100_v6  ;;  %116 = vmin.xlane.f32.xlu0 %v115_v7  ;;  %v105_v34 = vshll.u32 %v104_v27, 16  ;;  %v120_v35 = vshll.u32 %v119_v28, 16 }
 0x12d   :  { %v128_v8 = vpop.xlane.xlu1 %127  ;;  %v143_v9 = vpop.xlane.xlu0 %142 }
 0x12e   :  { %vm129_vm12 = vcmp.eq.f32.partialorder %v126_v45, %v128_v8  ;;  %vm144_vm13 = vcmp.eq.f32.partialorder %v141_v50, %v143_v9  ;;  %v134_v36 = vcvt.f32.s32 %v128_v8  ;;  %v149_v37 = vcvt.f32.s32 %v143_v9 }
 0x12f   :  { %v130_v14 = vsel %vm129_vm12, %v125_v10, inf  ;;  %v145_v15 = vsel %vm144_vm13, %v140_v11, inf  ;;  %v299_v50 = vmov 0.0  }
 0x130   :  { %131 = vmin.xlane.f32.xlu1 %v130_v14  ;;  %146 = vmin.xlane.f32.xlu0 %v145_v15  ;;  %v135_v47 = vshll.u32 %v134_v36, 16  ;;  %v150_v48 = vshll.u32 %v149_v37, 16  ;;  %17 = vst.msk [vmem:[#allocation2] sm:$0x1] %vm16_vm10, %v299_v50 }
 0x131   :  { %v158_v16 = vpop.xlane.xlu1 %157  ;;  %v173_v17 = vpop.xlane.xlu0 %172 }
 0x132   :  { %vm159_vm14 = vcmp.eq.f32.partialorder %v156_v53, %v158_v16  ;;  %vm174_vm15 = vcmp.eq.f32.partialorder %v171_v56, %v173_v17  ;;  %v164_v42 = vcvt.f32.s32 %v158_v16  ;;  %v179_v49 = vcvt.f32.s32 %v173_v17 }
 0x133   :  { %v160_v21 = vsel %vm159_vm14, %v155_v18, inf  ;;  %v175_v22 = vsel %vm174_vm15, %v170_v19, inf }
 0x134   :  { %161 = vmin.xlane.f32.xlu1 %v160_v21  ;;  %176 = vmin.xlane.f32.xlu0 %v175_v22  ;;  %v165_v56 = vshll.u32 %v164_v42, 16  ;;  %v180_v1 = vshll.u32 %v179_v49, 16 }
 0x135   :  { %v356_v23 = vpop.xlane.xlu1 %187 }
 0x136   :  { %vm189_vm0 = vcmp.eq.f32.partialorder %v186_v57, %v356_v23  ;;  %v194_v2 = vcvt.f32.s32 %v356_v23  ;;  %v33_v23 = vld [vmem:[%s405_s1 + $0x38] sm:$0xff] }
 0x137   :  { %v190_v25 = vsel %vm189_vm0, %v185_v24, inf }
 0x138   :  { %191 = vmin.xlane.f32.xlu1 %v190_v25  ;;  %v195_v17 = vshll.u32 %v194_v2, 16 }
 0x1b5   :  { %v87_v29 = vpop.xlane.xlu0 %86 }
 0x1b6   :  { %v88_v31 = vcvt.f32.s32 %v87_v29 }
 0x1b8   :  { %v91_v33 = vadd.s32 %v90_v30, %v88_v31 }
 0x1b9   :  { %v102_v38 = vpop.xlane.xlu1 %101  ;;  %v117_v39 = vpop.xlane.xlu0 %116 }
 0x1ba   :  { %vm197_vm1 = vcmp.eq.s32.totalorder %v91_v33, %v26_v32  ;;  %v103_v40 = vcvt.f32.s32 %v102_v38  ;;  %v118_v41 = vcvt.f32.s32 %v117_v39 }
 0x1bb   :  { %v273_v51 = vsel %vm197_vm1, 1.0, %v299_v50 }
 0x1bc   :  { %v106_v45 = vadd.s32 %v105_v34, %v103_v40  ;;  %v121_v46 = vadd.s32 %v120_v35, %v118_v41  ;;  %v223_v61 = vsel %vm222_vm2, %v273_v51, 0.0  ;;  %v221_v41 = vld [vmem:[#allocation2] sm:$0x1] }
 0x1bd   :  { %v132_v52 = vpop.xlane.xlu1 %131  ;;  %v147_v53 = vpop.xlane.xlu0 %146 }
 0x1be   :  { %vm198_vm3 = vcmp.eq.s32.totalorder %v106_v45, %v27_v43  ;;  %vm199_vm4 = vcmp.eq.s32.totalorder %v121_v46, %v28_v44  ;;  %v133_v54 = vcvt.f32.s32 %v132_v52  ;;  %v148_v55 = vcvt.f32.s32 %v147_v53 }
 0x1bf   :  { %v274_v57 = vsel %vm198_vm3, 1.0, %v299_v50  ;;  %v275_v58 = vsel %vm199_vm4, 1.0, %v299_v50 }
 0x1c0   :  { %v224_v62 = vsel %vm222_vm2, %v274_v57, 0.0  ;;  %v136_v63 = vadd.s32 %v135_v47, %v133_v54  ;;  %v151_v0 = vadd.s32 %v150_v48, %v148_v55  ;;  %v226_v4 = vsel %vm222_vm2, %v275_v58, 0.0 }
 0x1c1   :  { %v225_v3 = vadd.f32 %v224_v62, %v223_v61  ;;  %v162_v5 = vpop.xlane.xlu1 %161  ;;  %v177_v6 = vpop.xlane.xlu0 %176 }
 0x1c2   :  { %vm200_vm5 = vcmp.eq.s32.totalorder %v136_v63, %v29_v59  ;;  %vm201_vm6 = vcmp.eq.s32.totalorder %v151_v0, %v30_v60  ;;  %v163_v7 = vcvt.f32.s32 %v162_v5  ;;  %v178_v8 = vcvt.f32.s32 %v177_v6 }
 0x1c3   :  { %v227_v9 = vadd.f32 %v226_v4, %v225_v3  ;;  %v276_v10 = vsel %vm200_vm5, 1.0, %v299_v50  ;;  %v277_v11 = vsel %vm201_vm6, 1.0, %v299_v50 }
 0x1c4   :  { %v228_v14 = vsel %vm222_vm2, %v276_v10, 0.0  ;;  %v166_v15 = vadd.s32 %v165_v56, %v163_v7  ;;  %v181_v16 = vadd.s32 %v180_v1, %v178_v8  ;;  %v230_v20 = vsel %vm222_vm2, %v277_v11, 0.0 }
 0x1c5   :  { %v229_v18 = vadd.f32 %v228_v14, %v227_v9  ;;  %v192_v19 = vpop.xlane.xlu1 %191 }
 0x1c6   :  { %vm202_vm7 = vcmp.eq.s32.totalorder %v166_v15, %v31_v12  ;;  %vm203_vm8 = vcmp.eq.s32.totalorder %v181_v16, %v32_v13  ;;  %v193_v21 = vcvt.f32.s32 %v192_v19 }
 0x1c7   :  { %v278_v22 = vsel %vm202_vm7, 1.0, %v299_v50  ;;  %v279_v24 = vsel %vm203_vm8, 1.0, %v299_v50  ;;  %v231_v25 = vadd.f32 %v230_v20, %v229_v18 }
 0x1c8   :  { %v196_v26 = vadd.s32 %v195_v17, %v193_v21  ;;  %v232_v27 = vsel %vm222_vm2, %v278_v22, 0.0  ;;  %v234_v29 = vsel %vm222_vm2, %v279_v24, 0.0 }
 0x1c9   :  { %v233_v28 = vadd.f32 %v232_v27, %v231_v25 }
 0x1ca   :  { %vm204_vm9 = vcmp.eq.s32.totalorder %v196_v26, %v33_v23 }
 0x1cb   :  { %v280_v30 = vsel %vm204_vm9, 1.0, %v299_v50  ;;  %v235_v31 = vadd.f32 %v234_v29, %v233_v28 }
 0x1cc   :  { %v236_v32 = vsel %vm222_vm2, %v280_v30, 0.0 }
 0x1cd   :  { %v237_v33 = vadd.f32 %v236_v32, %v235_v31 }
 0x1cf   :  { %238 = vadd.xlane.f32.xlu0 %v237_v33 }
 0x25c   :  { %v239_v34 = vpop.xlane.xlu0 %238 }
 0x25d   :  { %v240_v35 = vrot.slane %v239_v34, 4 }
 0x25f   :  { %v241_v36 = vadd.f32 %v240_v35, %v239_v34 }
 0x261   :  { %v242_v37 = vrot.slane %v241_v36, 2 }
 0x263   :  { %v243_v38 = vadd.f32 %v242_v37, %v241_v36 }
 0x265   :  { %v244_v39 = vrot.slane %v243_v38, 1 }
 0x267   :  { %v245_v40 = vadd.f32 %v244_v39, %v243_v38 }
 0x269   :  { %281 = vpush %v245_v40 }
 0x29a   :  { %s282_s1 = spop %281 }
 0x29b   :  { %v247_v42 = vstv %s282_s1 }
 0x29c   :  { %v248_v43 = vadd.f32 %v247_v42, %v221_v41 }
 0x29e   :  { %250 = vst.msk [vmem:[#allocation2] sm:$0x1] %vm16_vm10, %v248_v43 }
 0x2a5   :  { %v254_v44 = vld [vmem:[#allocation2] sm:$0x1] }
 0x2a6   :  { %283 = vpush %v254_v44 }
 0x2d7   :  { %s284_s12 = spop %283 }
 0x2d8   :  { %s257_s13 = smul.f32 0.015625, %s284_s12 }
 0x2da   :  { %259 = sst [smem:[#allocation3]] %s257_s13 }
 0x2db   :  { %296 = shalt.err (!%p293_p2)
}
 0x2dc   :  { %s300_s21 = smov [#allocation3]  }
 0x2dd   :  { %267 = dma.smem_to_hbm %s300_s21, 16, %s406_s2, [#allocation4]  }
 0x2de   :  { %297 = dma.done.wait [#allocation4], 16  }
 0x2df   :  { %298 = vsyncadd [#allocation4], 4294967280 }
 0x2e0   :  { %271 = sfence }
 0x2e1   :  { %272 = vsyncpa [#allocation4], 1 }

</bundles_post_ra>
